<compile_context>
chip_gen: v6e
topology: v6e:2x2x1
jax: 0.10.0
libtpu: 0.0.40
codegen_flags: <defaults>
</compile_context>

<pallas_src>
import functools

import jax
import jax.numpy as jnp
from jax.experimental import pallas as pl
from jax.experimental.pallas import tpu as pltpu


# --------------------------------------------------------------------------- #
# Kernels
# --------------------------------------------------------------------------- #
def _conv3x3_kernel(x_ref, w_ref, b_ref, sc_ref, sh_ref,
                    o_ref, sum_ref, sq_ref, col_ref, *,
                    img_w, apply_input_bn_relu):
    """3x3 conv (padding=1) over one image in (C, H*W) layout, im2col form.

    x_ref  : (C_in, HW)          flattened image, HW on lanes
    w_ref  : (C_out, 9*C_in)     conv weight; column = (dy*3+dx)*C_in + c_in
    b_ref  : (C_out, 1)          conv bias
    sc_ref, sh_ref : (C_in, 1)   per-channel scale/shift applied (with ReLU) to
                                 the *input* when apply_input_bn_relu=True
                                 (fused BN+ReLU of the previous layer)
    o_ref  : (C_out, HW)         conv output
    sum_ref, sq_ref : (C_out, 1) per-image sum / sum-of-squares of the output
                                 (BatchNorm batch-statistic partials, f32)
    col_ref: (9*C_in, HW) f32    VMEM im2col scratch (f32 keeps sublane-aligned
                                 8-row stores for any matmul dtype)
    """
    c_in, hw = x_ref.shape

    x = x_ref[...]
    if apply_input_bn_relu:
        x = jnp.maximum(x * sc_ref[...] + sh_ref[...], 0.0)

    # Hoisted edge-validity masks (shared by all 9 taps).
    pos = jax.lax.broadcasted_iota(jnp.int32, (1, hw), 1)   # flat spatial index
    colp = pos % img_w                                      # w coordinate
    row_ok = (pos >= img_w, None, pos < hw - img_w)         # dy = 0, 1, 2
    col_ok = (colp >= 1, None, colp <= img_w - 2)           # dx = 0, 1, 2

    # Stage the 9 shifted / zero-padded taps into the im2col scratch.
    for dy in range(3):
        for dx in range(3):
            t = dy * 3 + dx
            s = (dy - 1) * img_w + (dx - 1)       # flat shift for this tap
            shifted = x if s == 0 else pltpu.roll(x, shift=(-s) % hw, axis=1)
            mask = row_ok[dy]
            if col_ok[dx] is not None:
                mask = col_ok[dx] if mask is None else mask & col_ok[dx]
            if mask is not None:
                shifted = jnp.where(mask, shifted, 0.0)
            col_ref[pl.ds(t * c_in, c_in), :] = shifted

    # One big MXU matmul: (C_out, 9*C_in) @ (9*C_in, HW), f32 accumulate.
    acc = jnp.dot(w_ref[...], col_ref[...].astype(w_ref.dtype),
                  preferred_element_type=jnp.float32)
    acc = acc + b_ref[...]

    # BatchNorm batch-statistic partials: lane reductions ride the XLU slot,
    # saving a full HBM re-read of the activation in the wrapper.
    sum_ref[...] = jnp.sum(acc, axis=-1, keepdims=True)
    sq_ref[...] = jnp.sum(acc * acc, axis=-1, keepdims=True)

    o_ref[...] = acc.astype(o_ref.dtype)


def _bn_relu_kernel(y_ref, sc_ref, sh_ref, o_ref):
    # y_ref: (C, HW), sc/sh: (C, 1) -> relu(y * scale + shift), lane-dense.
    o_ref[...] = jnp.maximum(
        y_ref[...] * sc_ref[...] + sh_ref[...], 0.0).astype(o_ref.dtype)


# --------------------------------------------------------------------------- #
# pallas_call wrappers
# --------------------------------------------------------------------------- #
def _round_up(v, m):
    return (v + m - 1) // m * m


def _conv3x3(x3, weight, bias, in_scale, in_shift, *, W,
             apply_input_bn_relu, matmul_dtype):
    """x3: (N, C_in, HW) -> (y, sum, sumsq).

    y: (N, C_out, HW); sum/sumsq: (N, C_out, 1) per-image BN partials (f32).
    weight: (C_out, C_in, 3, 3).
    """
    N, C_in, HW = x3.shape
    C_out = weight.shape[0]

    # Pad input channels to a multiple of 8 sublanes; zero channels are inert.
    C_in_p = _round_up(max(C_in, 8), 8)
    if C_in_p != C_in:
        pad = C_in_p - C_in
        x3 = jnp.pad(x3, ((0, 0), (0, pad), (0, 0)))
        weight = jnp.pad(weight, ((0, 0), (0, pad), (0, 0), (0, 0)))
        in_scale = jnp.pad(in_scale, (0, pad))
        in_shift = jnp.pad(in_shift, (0, pad))

    # (C_out, C_in_p, 3, 3) -> (C_out, 9*C_in_p); column = (dy*3+dx)*C_in_p + c,
    # matching the tap order used to fill the im2col scratch.  Tiny tensor.
    w2d = jnp.transpose(weight, (0, 2, 3, 1)).reshape(C_out, 9 * C_in_p)
    w2d = w2d.astype(matmul_dtype)

    kernel = functools.partial(_conv3x3_kernel, img_w=W,
                               apply_input_bn_relu=apply_input_bn_relu)
    return pl.pallas_call(
        kernel,
        out_shape=(
            jax.ShapeDtypeStruct((N, C_out, HW), x3.dtype),
            jax.ShapeDtypeStruct((N, C_out, 1), jnp.float32),
            jax.ShapeDtypeStruct((N, C_out, 1), jnp.float32),
        ),
        grid_spec=pltpu.PrefetchScalarGridSpec(
            num_scalar_prefetch=0,
            grid=(N,),
            in_specs=[
                pl.BlockSpec((None, C_in_p, HW), lambda n: (n, 0, 0)),
                pl.BlockSpec((C_out, 9 * C_in_p), lambda n: (0, 0)),
                pl.BlockSpec((C_out, 1), lambda n: (0, 0)),
                pl.BlockSpec((C_in_p, 1), lambda n: (0, 0)),
                pl.BlockSpec((C_in_p, 1), lambda n: (0, 0)),
            ],
            out_specs=(
                pl.BlockSpec((None, C_out, HW), lambda n: (n, 0, 0)),
                pl.BlockSpec((None, C_out, 1), lambda n: (n, 0, 0)),
                pl.BlockSpec((None, C_out, 1), lambda n: (n, 0, 0)),
            ),
            scratch_shapes=[pltpu.VMEM((9 * C_in_p, HW), jnp.float32)],
        ),
        compiler_params=pltpu.CompilerParams(
            dimension_semantics=("parallel",)),
    )(x3, w2d, bias.reshape(C_out, 1).astype(jnp.float32),
      in_scale.reshape(C_in_p, 1).astype(jnp.float32),
      in_shift.reshape(C_in_p, 1).astype(jnp.float32))


def _bn_relu(y3, scale, shift):
    """y3: (N, C, HW); per-channel affine + ReLU (pure streaming pass)."""
    N, C, HW = y3.shape
    return pl.pallas_call(
        _bn_relu_kernel,
        out_shape=jax.ShapeDtypeStruct((N, C, HW), y3.dtype),
        grid_spec=pltpu.PrefetchScalarGridSpec(
            num_scalar_prefetch=0,
            grid=(N,),
            in_specs=[
                pl.BlockSpec((None, C, HW), lambda n: (n, 0, 0)),
                pl.BlockSpec((C, 1), lambda n: (0, 0)),
                pl.BlockSpec((C, 1), lambda n: (0, 0)),
            ],
            out_specs=pl.BlockSpec((None, C, HW), lambda n: (n, 0, 0)),
        ),
        compiler_params=pltpu.CompilerParams(
            dimension_semantics=("parallel",)),
    )(y3, scale.reshape(C, 1), shift.reshape(C, 1))


# --------------------------------------------------------------------------- #
# DoubleConv forward
# --------------------------------------------------------------------------- #
@functools.partial(jax.jit, static_argnames=("matmul_dtype",))
def double_conv_forward(x_nchw, params, eps=1e-5, matmul_dtype=jnp.float32):
    """(Conv3x3 -> BN -> ReLU) * 2, NCHW in / NCHW out (training-mode BN)."""
    w1, b1, g1, be1, w2, b2, g2, be2 = params
    N, C_in, H, W = x_nchw.shape
    C_out = w2.shape[0]
    HW = H * W
    cnt = jnp.float32(N * HW)

    x3 = x_nchw.reshape(N, C_in, HW)       # free: NCHW is already (N, C, H*W)

    ident_sc = jnp.ones((C_in,), jnp.float32)
    ident_sh = jnp.zeros((C_in,), jnp.float32)

    # ---- conv1 (+ in-kernel BN1 statistic partials) ----
    y1, s1, q1 = _conv3x3(x3, w1, b1, ident_sc, ident_sh, W=W,
                          apply_input_bn_relu=False, matmul_dtype=matmul_dtype)
    m1 = jnp.sum(s1[:, :, 0], axis=0) / cnt
    v1 = jnp.maximum(jnp.sum(q1[:, :, 0], axis=0) / cnt - m1 * m1, 0.0)
    sc1 = g1 * jax.lax.rsqrt(v1 + eps)
    sh1 = be1 - m1 * sc1

    # ---- conv2 with BN1 + ReLU fused onto its input ----
    y2, s2, q2 = _conv3x3(y1, w2, b2, sc1, sh1, W=W,
                          apply_input_bn_relu=True, matmul_dtype=matmul_dtype)
    m2 = jnp.sum(s2[:, :, 0], axis=0) / cnt
    v2 = jnp.maximum(jnp.sum(q2[:, :, 0], axis=0) / cnt - m2 * m2, 0.0)
    sc2 = g2 * jax.lax.rsqrt(v2 + eps)
    sh2 = be2 - m2 * sc2

    # ---- final BN2 + ReLU ----
    out3 = _bn_relu(y2, sc2, sh2)
    return out3.reshape(N, C_out, H, W)


# --------------------------------------------------------------------------- #
# Parameter init + pure-JAX reference
# --------------------------------------------------------------------------- #
def init_double_conv_params(key, in_channels, out_channels, mid_channels=None):
    if mid_channels is None:
        mid_channels = out_channels
    k = jax.random.split(key, 8)

    def conv_init(kw, kb, cin, cout):
        bound = 1.0 / jnp.sqrt(jnp.float32(cin * 9))
        w = jax.random.uniform(kw, (cout, cin, 3, 3), jnp.float32, -bound, bound)
        b = jax.random.uniform(kb, (cout,), jnp.float32, -bound, bound)
        return w, b

    w1, b1 = conv_init(k[0], k[1], in_channels, mid_channels)
    w2, b2 = conv_init(k[2], k[3], mid_channels, out_channels)
    g1 = 1.0 + 0.1 * jax.random.normal(k[4], (mid_channels,), jnp.float32)
    be1 = 0.1 * jax.random.normal(k[5], (mid_channels,), jnp.float32)
    g2 = 1.0 + 0.1 * jax.random.normal(k[6], (out_channels,), jnp.float32)
    be2 = 0.1 * jax.random.normal(k[7], (out_channels,), jnp.float32)
    return (w1, b1, g1, be1, w2, b2, g2, be2)


def _reference(x, params, eps=1e-5):
    w1, b1, g1, be1, w2, b2, g2, be2 = params

    def conv3x3(x, w, b):
        y = jax.lax.conv_general_dilated(
            x, w, window_strides=(1, 1), padding=((1, 1), (1, 1)),
            dimension_numbers=("NCHW", "OIHW", "NCHW"),
            precision=jax.lax.Precision.HIGHEST)
        return y + b.reshape(1, -1, 1, 1)

    def bn_relu(y, g, be):
        m = jnp.mean(y, axis=(0, 2, 3), keepdims=True)
        v = jnp.var(y, axis=(0, 2, 3), keepdims=True)
        yn = (y - m) * jax.lax.rsqrt(v + eps)
        return jnp.maximum(yn * g.reshape(1, -1, 1, 1) + be.reshape(1, -1, 1, 1),
                           0.0)

    y = bn_relu(conv3x3(x, w1, b1), g1, be1)
    return bn_relu(conv3x3(y, w2, b2), g2, be2)


# --------------------------------------------------------------------------- #
if __name__ == "__main__":
    key = jax.random.PRNGKey(0)
    kx, kp = jax.random.split(key)

    N, C_in, C_out, H, W = 2, 4, 8, 16, 16   # DoubleConv default: mid = out
    x = jax.random.normal(kx, (N, C_in, H, W), jnp.float32)
    params = init_double_conv_params(kp, C_in, C_out)

    # f32 matmul path: must match the f32 reference tightly.
    out = jax.block_until_ready(double_conv_forward(x, params))
    ref = _reference(x, params)
    assert out.shape == (N, C_out, H, W)
    max_err = float(jnp.max(jnp.abs(out - ref)))
    assert jnp.allclose(out, ref, atol=2e-4, rtol=2e-4), f"max_err={max_err}"

    # bf16 matmul-operand variant (bf16-native MXUs on v5e/v6e/v7x); only the
    # matmul rounding differs, so check loosely and for finiteness.
    out_bf16 = jax.block_until_ready(
        double_conv_forward(x, params, matmul_dtype=jnp.bfloat16))
    assert bool(jnp.all(jnp.isfinite(out_bf16)))
    bf16_err = float(jnp.max(jnp.abs(out_bf16 - ref)))
    assert bf16_err < 0.25, f"bf16_err={bf16_err}"

    print("KERNEL_OK")
</pallas_src>

<mosaic_0001>
module attributes {stable_mosaic.version = 11 : i64} {
  func.func @_bn_relu_kernel(%arg0: i32, %arg1: memref<1x8x256xf32, #tpu.memory_space<vmem>>, %arg2: memref<8x1xf32, #tpu.memory_space<vmem>>, %arg3: memref<8x1xf32, #tpu.memory_space<vmem>>, %arg4: memref<1x8x256xf32, #tpu.memory_space<vmem>>) attributes {dimension_semantics = [#tpu.dimension_semantics<parallel>], iteration_bounds = array<i64: 2>, scalar_prefetch = 0 : i64, scratch_operands = 0 : i64, tpu.core_type = #tpu.core_type<tc>, window_params = [{transform_indices = @transform_0, window_bounds = array<i64: 1, 8, 256>}, {pipeline_mode = #tpu.pipeline_mode<synchronous>, transform_indices = @transform_1, window_bounds = array<i64: 8, 1>}, {pipeline_mode = #tpu.pipeline_mode<synchronous>, transform_indices = @transform_2, window_bounds = array<i64: 8, 1>}, {transform_indices = @transform_3, window_bounds = array<i64: 1, 8, 256>}]} {
    %c0 = arith.constant 0 : index
    %c0_0 = arith.constant 0 : index
    %c0_1 = arith.constant 0 : index
    %0 = vector.load %arg1[%c0, %c0_0, %c0_1] : memref<1x8x256xf32, #tpu.memory_space<vmem>>, vector<1x8x256xf32>
    %1 = vector.shape_cast %0 : vector<1x8x256xf32> to vector<8x256xf32>
    %c0_2 = arith.constant 0 : index
    %c0_3 = arith.constant 0 : index
    %2 = vector.load %arg2[%c0_2, %c0_3] : memref<8x1xf32, #tpu.memory_space<vmem>>, vector<8x1xf32>
    %3 = vector.broadcast %2 : vector<8x1xf32> to vector<8x256xf32>
    %4 = arith.mulf %1, %3 : vector<8x256xf32>
    %c0_4 = arith.constant 0 : index
    %c0_5 = arith.constant 0 : index
    %5 = vector.load %arg3[%c0_4, %c0_5] : memref<8x1xf32, #tpu.memory_space<vmem>>, vector<8x1xf32>
    %6 = vector.broadcast %5 : vector<8x1xf32> to vector<8x256xf32>
    %7 = arith.addf %4, %6 : vector<8x256xf32>
    %cst = arith.constant 0.000000e+00 : f32
    %8 = vector.broadcast %cst : f32 to vector<8x256xf32>
    %9 = arith.maximumf %7, %8 : vector<8x256xf32>
    %c0_6 = arith.constant 0 : index
    %c0_7 = arith.constant 0 : index
    %c0_8 = arith.constant 0 : index
    %10 = vector.load %arg4[%c0_6, %c0_7, %c0_8] : memref<1x8x256xf32, #tpu.memory_space<vmem>>, vector<1x8x256xf32>
    %11 = vector.shape_cast %10 : vector<1x8x256xf32> to vector<8x256xf32>
    %12 = vector.shape_cast %9 : vector<8x256xf32> to vector<1x8x256xf32>
    tpu.vector_store %arg4[%c0_6, %c0_7, %c0_8], %12 {strides = array<i32>} : memref<1x8x256xf32, #tpu.memory_space<vmem>>, vector<1x8x256xf32>,
    return
  }
  func.func @transform_0(%arg0: i32) -> (i32, i32, i32) {
    %c0_i32 = arith.constant 0 : i32
    %c0_i32_0 = arith.constant 0 : i32
    %c0_i32_1 = arith.constant 0 : i32
    return %arg0, %c0_i32, %c0_i32_0 : i32, i32, i32
  }
  func.func @transform_1(%arg0: i32) -> (i32, i32) {
    %c0_i32 = arith.constant 0 : i32
    %c0_i32_0 = arith.constant 0 : i32
    %c0_i32_1 = arith.constant 0 : i32
    return %c0_i32, %c0_i32_0 : i32, i32
  }
  func.func @transform_2(%arg0: i32) -> (i32, i32) {
    %c0_i32 = arith.constant 0 : i32
    %c0_i32_0 = arith.constant 0 : i32
    %c0_i32_1 = arith.constant 0 : i32
    return %c0_i32, %c0_i32_0 : i32, i32
  }
  func.func @transform_3(%arg0: i32) -> (i32, i32, i32) {
    %c0_i32 = arith.constant 0 : i32
    %c0_i32_0 = arith.constant 0 : i32
    %c0_i32_1 = arith.constant 0 : i32
    return %arg0, %c0_i32, %c0_i32_0 : i32, i32, i32
  }
}

module attributes {stable_mosaic.version = 11 : i64} {
  func.func @_conv3x3_kernel(%arg0: i32, %arg1: memref<1x8x256xf32, #tpu.memory_space<vmem>>, %arg2: memref<8x72xf32, #tpu.memory_space<vmem>>, %arg3: memref<8x1xf32, #tpu.memory_space<vmem>>, %arg4: memref<8x1xf32, #tpu.memory_space<vmem>>, %arg5: memref<8x1xf32, #tpu.memory_space<vmem>>, %arg6: memref<1x8x256xf32, #tpu.memory_space<vmem>>, %arg7: memref<1x8x1xf32, #tpu.memory_space<vmem>>, %arg8: memref<1x8x1xf32, #tpu.memory_space<vmem>>, %arg9: memref<72x256xf32, #tpu.memory_space<vmem>>) attributes {dimension_semantics = [#tpu.dimension_semantics<parallel>], iteration_bounds = array<i64: 2>, scalar_prefetch = 0 : i64, scratch_operands = 1 : i64, tpu.core_type = #tpu.core_type<tc>, window_params = [{transform_indices = @transform_0, window_bounds = array<i64: 1, 8, 256>}, {pipeline_mode = #tpu.pipeline_mode<synchronous>, transform_indices = @transform_1, window_bounds = array<i64: 8, 72>}, {pipeline_mode = #tpu.pipeline_mode<synchronous>, transform_indices = @transform_2, window_bounds = array<i64: 8, 1>}, {pipeline_mode = #tpu.pipeline_mode<synchronous>, transform_indices = @transform_3, window_bounds = array<i64: 8, 1>}, {pipeline_mode = #tpu.pipeline_mode<synchronous>, transform_indices = @transform_4, window_bounds = array<i64: 8, 1>}, {transform_indices = @transform_5, window_bounds = array<i64: 1, 8, 256>}, {transform_indices = @transform_6, window_bounds = array<i64: 1, 8, 1>}, {transform_indices = @transform_7, window_bounds = array<i64: 1, 8, 1>}]} {
    %c0 = arith.constant 0 : index
    %c0_0 = arith.constant 0 : index
    %c0_1 = arith.constant 0 : index
    %0 = vector.load %arg1[%c0, %c0_0, %c0_1] : memref<1x8x256xf32, #tpu.memory_space<vmem>>, vector<1x8x256xf32>
    %1 = vector.shape_cast %0 : vector<1x8x256xf32> to vector<8x256xf32>
    %2 = tpu.iota {dimensions = array<i32: 1>} : vector<1x256xi32>
    %c16_i32 = arith.constant 16 : i32
    %c0_i32 = arith.constant 0 : i32
    %3 = arith.cmpi eq, %c16_i32, %c0_i32 : i32
    %c1_i32 = arith.constant 1 : i32
    %4 = arith.select %3, %c1_i32, %c16_i32 : i32
    %5 = vector.broadcast %4 : i32 to vector<1x256xi32>
    %6 = arith.remsi %2, %5 : vector<1x256xi32>
    %c0_i32_2 = arith.constant 0 : i32
    %7 = vector.broadcast %c0_i32_2 : i32 to vector<1x256xi32>
    %8 = arith.cmpi ne, %6, %7 : vector<1x256xi32>
    %c0_i32_3 = arith.constant 0 : i32
    %9 = vector.broadcast %c0_i32_3 : i32 to vector<1x256xi32>
    %10 = arith.cmpi slt, %6, %9 : vector<1x256xi32>
    %c0_i32_4 = arith.constant 0 : i32
    %11 = arith.cmpi slt, %4, %c0_i32_4 : i32
    %12 = vector.broadcast %11 : i1 to vector<1x256xi1>
    %13 = vector.broadcast %12 : vector<1x256xi1> to vector<1x256xi1>
    %14 = arith.xori %10, %13 : vector<1x256xi1>
    %15 = arith.andi %14, %8 : vector<1x256xi1>
    %16 = vector.broadcast %4 : i32 to vector<1x256xi32>
    %17 = arith.addi %6, %16 : vector<1x256xi32>
    %18 = arith.select %15, %17, %6 : vector<1x256xi1>, vector<1x256xi32>
    %c16_i32_5 = arith.constant 16 : i32
    %19 = vector.broadcast %c16_i32_5 : i32 to vector<1x256xi32>
    %20 = arith.cmpi sge, %2, %19 : vector<1x256xi32>
    %c240_i32 = arith.constant 240 : i32
    %21 = vector.broadcast %c240_i32 : i32 to vector<1x256xi32>
    %22 = arith.cmpi slt, %2, %21 : vector<1x256xi32>
    %c1_i32_6 = arith.constant 1 : i32
    %23 = vector.broadcast %c1_i32_6 : i32 to vector<1x256xi32>
    %24 = arith.cmpi sge, %18, %23 : vector<1x256xi32>
    %c14_i32 = arith.constant 14 : i32
    %25 = vector.broadcast %c14_i32 : i32 to vector<1x256xi32>
    %26 = arith.cmpi sle, %18, %25 : vector<1x256xi32>
    %c17_i32 = arith.constant 17 : i32
    %27 = tpu.dynamic_rotate %1 by %c17_i32 dim 1 : vector<8x256xf32>, i32 -> vector<8x256xf32>
    %28 = arith.andi %20, %24 : vector<1x256xi1>
    %cst = arith.constant 0.000000e+00 : f32
    %29 = vector.shape_cast %28 : vector<1x256xi1> to vector<1x256xi1>
    %30 = vector.broadcast %29 : vector<1x256xi1> to vector<8x256xi1>
    %31 = vector.broadcast %cst : f32 to vector<8x256xf32>
    %32 = arith.select %30, %27, %31 : vector<8x256xi1>, vector<8x256xf32>
    %c0_7 = arith.constant 0 : index
    %c0_8 = arith.constant 0 : index
    %33 = vector.load %arg9[%c0_7, %c0_8] : memref<72x256xf32, #tpu.memory_space<vmem>>, vector<8x256xf32>
    tpu.vector_store %arg9[%c0_7, %c0_8], %32 {strides = array<i32>} : memref<72x256xf32, #tpu.memory_space<vmem>>, vector<8x256xf32>,
    %c16_i32_9 = arith.constant 16 : i32
    %34 = tpu.dynamic_rotate %1 by %c16_i32_9 dim 1 : vector<8x256xf32>, i32 -> vector<8x256xf32>
    %cst_10 = arith.constant 0.000000e+00 : f32
    %35 = vector.shape_cast %20 : vector<1x256xi1> to vector<1x256xi1>
    %36 = vector.broadcast %35 : vector<1x256xi1> to vector<8x256xi1>
    %37 = vector.broadcast %cst_10 : f32 to vector<8x256xf32>
    %38 = arith.select %36, %34, %37 : vector<8x256xi1>, vector<8x256xf32>
    %c8 = arith.constant 8 : index
    %c0_11 = arith.constant 0 : index
    %39 = vector.load %arg9[%c8, %c0_11] : memref<72x256xf32, #tpu.memory_space<vmem>>, vector<8x256xf32>
    tpu.vector_store %arg9[%c8, %c0_11], %38 {strides = array<i32>} : memref<72x256xf32, #tpu.memory_space<vmem>>, vector<8x256xf32>,
    %c15_i32 = arith.constant 15 : i32
    %40 = tpu.dynamic_rotate %1 by %c15_i32 dim 1 : vector<8x256xf32>, i32 -> vector<8x256xf32>
    %41 = arith.andi %20, %26 : vector<1x256xi1>
    %cst_12 = arith.constant 0.000000e+00 : f32
    %42 = vector.shape_cast %41 : vector<1x256xi1> to vector<1x256xi1>
    %43 = vector.broadcast %42 : vector<1x256xi1> to vector<8x256xi1>
    %44 = vector.broadcast %cst_12 : f32 to vector<8x256xf32>
    %45 = arith.select %43, %40, %44 : vector<8x256xi1>, vector<8x256xf32>
    %c16 = arith.constant 16 : index
    %c0_13 = arith.constant 0 : index
    %46 = vector.load %arg9[%c16, %c0_13] : memref<72x256xf32, #tpu.memory_space<vmem>>, vector<8x256xf32>
    tpu.vector_store %arg9[%c16, %c0_13], %45 {strides = array<i32>} : memref<72x256xf32, #tpu.memory_space<vmem>>, vector<8x256xf32>,
    %c1_i32_14 = arith.constant 1 : i32
    %47 = tpu.dynamic_rotate %1 by %c1_i32_14 dim 1 : vector<8x256xf32>, i32 -> vector<8x256xf32>
    %cst_15 = arith.constant 0.000000e+00 : f32
    %48 = vector.shape_cast %24 : vector<1x256xi1> to vector<1x256xi1>
    %49 = vector.broadcast %48 : vector<1x256xi1> to vector<8x256xi1>
    %50 = vector.broadcast %cst_15 : f32 to vector<8x256xf32>
    %51 = arith.select %49, %47, %50 : vector<8x256xi1>, vector<8x256xf32>
    %c24 = arith.constant 24 : index
    %c0_16 = arith.constant 0 : index
    %52 = vector.load %arg9[%c24, %c0_16] : memref<72x256xf32, #tpu.memory_space<vmem>>, vector<8x256xf32>
    tpu.vector_store %arg9[%c24, %c0_16], %51 {strides = array<i32>} : memref<72x256xf32, #tpu.memory_space<vmem>>, vector<8x256xf32>,
    %c32 = arith.constant 32 : index
    %c0_17 = arith.constant 0 : index
    %53 = vector.load %arg9[%c32, %c0_17] : memref<72x256xf32, #tpu.memory_space<vmem>>, vector<8x256xf32>
    tpu.vector_store %arg9[%c32, %c0_17], %1 {strides = array<i32>} : memref<72x256xf32, #tpu.memory_space<vmem>>, vector<8x256xf32>,
    %c255_i32 = arith.constant 255 : i32
    %54 = tpu.dynamic_rotate %1 by %c255_i32 dim 1 : vector<8x256xf32>, i32 -> vector<8x256xf32>
    %cst_18 = arith.constant 0.000000e+00 : f32
    %55 = vector.shape_cast %26 : vector<1x256xi1> to vector<1x256xi1>
    %56 = vector.broadcast %55 : vector<1x256xi1> to vector<8x256xi1>
    %57 = vector.broadcast %cst_18 : f32 to vector<8x256xf32>
    %58 = arith.select %56, %54, %57 : vector<8x256xi1>, vector<8x256xf32>
    %c40 = arith.constant 40 : index
    %c0_19 = arith.constant 0 : index
    %59 = vector.load %arg9[%c40, %c0_19] : memref<72x256xf32, #tpu.memory_space<vmem>>, vector<8x256xf32>
    tpu.vector_store %arg9[%c40, %c0_19], %58 {strides = array<i32>} : memref<72x256xf32, #tpu.memory_space<vmem>>, vector<8x256xf32>,
    %c241_i32 = arith.constant 241 : i32
    %60 = tpu.dynamic_rotate %1 by %c241_i32 dim 1 : vector<8x256xf32>, i32 -> vector<8x256xf32>
    %61 = arith.andi %22, %24 : vector<1x256xi1>
    %cst_20 = arith.constant 0.000000e+00 : f32
    %62 = vector.shape_cast %61 : vector<1x256xi1> to vector<1x256xi1>
    %63 = vector.broadcast %62 : vector<1x256xi1> to vector<8x256xi1>
    %64 = vector.broadcast %cst_20 : f32 to vector<8x256xf32>
    %65 = arith.select %63, %60, %64 : vector<8x256xi1>, vector<8x256xf32>
    %c48 = arith.constant 48 : index
    %c0_21 = arith.constant 0 : index
    %66 = vector.load %arg9[%c48, %c0_21] : memref<72x256xf32, #tpu.memory_space<vmem>>, vector<8x256xf32>
    tpu.vector_store %arg9[%c48, %c0_21], %65 {strides = array<i32>} : memref<72x256xf32, #tpu.memory_space<vmem>>, vector<8x256xf32>,
    %c240_i32_22 = arith.constant 240 : i32
    %67 = tpu.dynamic_rotate %1 by %c240_i32_22 dim 1 : vector<8x256xf32>, i32 -> vector<8x256xf32>
    %cst_23 = arith.constant 0.000000e+00 : f32
    %68 = vector.shape_cast %22 : vector<1x256xi1> to vector<1x256xi1>
    %69 = vector.broadcast %68 : vector<1x256xi1> to vector<8x256xi1>
    %70 = vector.broadcast %cst_23 : f32 to vector<8x256xf32>
    %71 = arith.select %69, %67, %70 : vector<8x256xi1>, vector<8x256xf32>
    %c56 = arith.constant 56 : index
    %c0_24 = arith.constant 0 : index
    %72 = vector.load %arg9[%c56, %c0_24] : memref<72x256xf32, #tpu.memory_space<vmem>>, vector<8x256xf32>
    tpu.vector_store %arg9[%c56, %c0_24], %71 {strides = array<i32>} : memref<72x256xf32, #tpu.memory_space<vmem>>, vector<8x256xf32>,
    %c239_i32 = arith.constant 239 : i32
    %73 = tpu.dynamic_rotate %1 by %c239_i32 dim 1 : vector<8x256xf32>, i32 -> vector<8x256xf32>
    %74 = arith.andi %22, %26 : vector<1x256xi1>
    %cst_25 = arith.constant 0.000000e+00 : f32
    %75 = vector.shape_cast %74 : vector<1x256xi1> to vector<1x256xi1>
    %76 = vector.broadcast %75 : vector<1x256xi1> to vector<8x256xi1>
    %77 = vector.broadcast %cst_25 : f32 to vector<8x256xf32>
    %78 = arith.select %76, %73, %77 : vector<8x256xi1>, vector<8x256xf32>
    %c64 = arith.constant 64 : index
    %c0_26 = arith.constant 0 : index
    %79 = vector.load %arg9[%c64, %c0_26] : memref<72x256xf32, #tpu.memory_space<vmem>>, vector<8x256xf32>
    tpu.vector_store %arg9[%c64, %c0_26], %78 {strides = array<i32>} : memref<72x256xf32, #tpu.memory_space<vmem>>, vector<8x256xf32>,
    %c0_27 = arith.constant 0 : index
    %c0_28 = arith.constant 0 : index
    %80 = vector.load %arg2[%c0_27, %c0_28] : memref<8x72xf32, #tpu.memory_space<vmem>>, vector<8x72xf32>
    %c0_29 = arith.constant 0 : index
    %c0_30 = arith.constant 0 : index
    %81 = vector.load %arg9[%c0_29, %c0_30] : memref<72x256xf32, #tpu.memory_space<vmem>>, vector<72x256xf32>
    %cst_31 = arith.constant dense<0.000000e+00> : vector<8x256xf32>
    %82 = tpu.matmul %80, %81, %cst_31 {dimension_numbers = #tpu.dot_dimension_numbers<[1], [0], [0], [1], [0, 0, 1, 1], [], []>} : vector<8x72xf32>, vector<72x256xf32>, vector<8x256xf32> -> vector<8x256xf32>
    %c0_32 = arith.constant 0 : index
    %c0_33 = arith.constant 0 : index
    %83 = vector.load %arg3[%c0_32, %c0_33] : memref<8x1xf32, #tpu.memory_space<vmem>>, vector<8x1xf32>
    %84 = vector.broadcast %83 : vector<8x1xf32> to vector<8x256xf32>
    %85 = arith.addf %82, %84 : vector<8x256xf32>
    %cst_34 = arith.constant dense<0.000000e+00> : vector<8xf32>
    %86 = vector.multi_reduction <add>, %85, %cst_34 [1] : vector<8x256xf32> to vector<8xf32>
    %87 = vector.shape_cast %86 : vector<8xf32> to vector<8x1xf32>
    %c0_35 = arith.constant 0 : index
    %c0_36 = arith.constant 0 : index
    %c0_37 = arith.constant 0 : index
    %88 = vector.load %arg7[%c0_35, %c0_36, %c0_37] : memref<1x8x1xf32, #tpu.memory_space<vmem>>, vector<1x8x1xf32>
    %89 = vector.shape_cast %88 : vector<1x8x1xf32> to vector<8x1xf32>
    %90 = vector.shape_cast %87 : vector<8x1xf32> to vector<1x8x1xf32>
    tpu.vector_store %arg7[%c0_35, %c0_36, %c0_37], %90 {strides = array<i32>} : memref<1x8x1xf32, #tpu.memory_space<vmem>>, vector<1x8x1xf32>,
    %91 = arith.mulf %85, %85 : vector<8x256xf32>
    %cst_38 = arith.constant dense<0.000000e+00> : vector<8xf32>
    %92 = vector.multi_reduction <add>, %91, %cst_38 [1] : vector<8x256xf32> to vector<8xf32>
    %93 = vector.shape_cast %92 : vector<8xf32> to vector<8x1xf32>
    %c0_39 = arith.constant 0 : index
    %c0_40 = arith.constant 0 : index
    %c0_41 = arith.constant 0 : index
    %94 = vector.load %arg8[%c0_39, %c0_40, %c0_41] : memref<1x8x1xf32, #tpu.memory_space<vmem>>, vector<1x8x1xf32>
    %95 = vector.shape_cast %94 : vector<1x8x1xf32> to vector<8x1xf32>
    %96 = vector.shape_cast %93 : vector<8x1xf32> to vector<1x8x1xf32>
    tpu.vector_store %arg8[%c0_39, %c0_40, %c0_41], %96 {strides = array<i32>} : memref<1x8x1xf32, #tpu.memory_space<vmem>>, vector<1x8x1xf32>,
    %c0_42 = arith.constant 0 : index
    %c0_43 = arith.constant 0 : index
    %c0_44 = arith.constant 0 : index
    %97 = vector.load %arg6[%c0_42, %c0_43, %c0_44] : memref<1x8x256xf32, #tpu.memory_space<vmem>>, vector<1x8x256xf32>
    %98 = vector.shape_cast %97 : vector<1x8x256xf32> to vector<8x256xf32>
    %99 = vector.shape_cast %85 : vector<8x256xf32> to vector<1x8x256xf32>
    tpu.vector_store %arg6[%c0_42, %c0_43, %c0_44], %99 {strides = array<i32>} : memref<1x8x256xf32, #tpu.memory_space<vmem>>, vector<1x8x256xf32>,
    return
  }
  func.func @transform_0(%arg0: i32) -> (i32, i32, i32) {
    %c0_i32 = arith.constant 0 : i32
    %c0_i32_0 = arith.constant 0 : i32
    %c0_i32_1 = arith.constant 0 : i32
    return %arg0, %c0_i32, %c0_i32_0 : i32, i32, i32
  }
  func.func @transform_1(%arg0: i32) -> (i32, i32) {
    %c0_i32 = arith.constant 0 : i32
    %c0_i32_0 = arith.constant 0 : i32
    %c0_i32_1 = arith.constant 0 : i32
    return %c0_i32, %c0_i32_0 : i32, i32
  }
  func.func @transform_2(%arg0: i32) -> (i32, i32) {
    %c0_i32 = arith.constant 0 : i32
    %c0_i32_0 = arith.constant 0 : i32
    %c0_i32_1 = arith.constant 0 : i32
    return %c0_i32, %c0_i32_0 : i32, i32
  }
  func.func @transform_3(%arg0: i32) -> (i32, i32) {
    %c0_i32 = arith.constant 0 : i32
    %c0_i32_0 = arith.constant 0 : i32
    %c0_i32_1 = arith.constant 0 : i32
    return %c0_i32, %c0_i32_0 : i32, i32
  }
  func.func @transform_4(%arg0: i32) -> (i32, i32) {
    %c0_i32 = arith.constant 0 : i32
    %c0_i32_0 = arith.constant 0 : i32
    %c0_i32_1 = arith.constant 0 : i32
    return %c0_i32, %c0_i32_0 : i32, i32
  }
  func.func @transform_5(%arg0: i32) -> (i32, i32, i32) {
    %c0_i32 = arith.constant 0 : i32
    %c0_i32_0 = arith.constant 0 : i32
    %c0_i32_1 = arith.constant 0 : i32
    return %arg0, %c0_i32, %c0_i32_0 : i32, i32, i32
  }
  func.func @transform_6(%arg0: i32) -> (i32, i32, i32) {
    %c0_i32 = arith.constant 0 : i32
    %c0_i32_0 = arith.constant 0 : i32
    %c0_i32_1 = arith.constant 0 : i32
    return %arg0, %c0_i32, %c0_i32_0 : i32, i32, i32
  }
  func.func @transform_7(%arg0: i32) -> (i32, i32, i32) {
    %c0_i32 = arith.constant 0 : i32
    %c0_i32_0 = arith.constant 0 : i32
    %c0_i32_1 = arith.constant 0 : i32
    return %arg0, %c0_i32, %c0_i32_0 : i32, i32, i32
  }
}

module attributes {stable_mosaic.version = 11 : i64} {
  func.func @_conv3x3_kernel(%arg0: i32, %arg1: memref<1x8x256xf32, #tpu.memory_space<vmem>>, %arg2: memref<8x72xf32, #tpu.memory_space<vmem>>, %arg3: memref<8x1xf32, #tpu.memory_space<vmem>>, %arg4: memref<8x1xf32, #tpu.memory_space<vmem>>, %arg5: memref<8x1xf32, #tpu.memory_space<vmem>>, %arg6: memref<1x8x256xf32, #tpu.memory_space<vmem>>, %arg7: memref<1x8x1xf32, #tpu.memory_space<vmem>>, %arg8: memref<1x8x1xf32, #tpu.memory_space<vmem>>, %arg9: memref<72x256xf32, #tpu.memory_space<vmem>>) attributes {dimension_semantics = [#tpu.dimension_semantics<parallel>], iteration_bounds = array<i64: 2>, scalar_prefetch = 0 : i64, scratch_operands = 1 : i64, tpu.core_type = #tpu.core_type<tc>, window_params = [{transform_indices = @transform_0, window_bounds = array<i64: 1, 8, 256>}, {pipeline_mode = #tpu.pipeline_mode<synchronous>, transform_indices = @transform_1, window_bounds = array<i64: 8, 72>}, {pipeline_mode = #tpu.pipeline_mode<synchronous>, transform_indices = @transform_2, window_bounds = array<i64: 8, 1>}, {pipeline_mode = #tpu.pipeline_mode<synchronous>, transform_indices = @transform_3, window_bounds = array<i64: 8, 1>}, {pipeline_mode = #tpu.pipeline_mode<synchronous>, transform_indices = @transform_4, window_bounds = array<i64: 8, 1>}, {transform_indices = @transform_5, window_bounds = array<i64: 1, 8, 256>}, {transform_indices = @transform_6, window_bounds = array<i64: 1, 8, 1>}, {transform_indices = @transform_7, window_bounds = array<i64: 1, 8, 1>}]} {
    %c0 = arith.constant 0 : index
    %c0_0 = arith.constant 0 : index
    %c0_1 = arith.constant 0 : index
    %0 = vector.load %arg1[%c0, %c0_0, %c0_1] : memref<1x8x256xf32, #tpu.memory_space<vmem>>, vector<1x8x256xf32>
    %1 = vector.shape_cast %0 : vector<1x8x256xf32> to vector<8x256xf32>
    %c0_2 = arith.constant 0 : index
    %c0_3 = arith.constant 0 : index
    %2 = vector.load %arg4[%c0_2, %c0_3] : memref<8x1xf32, #tpu.memory_space<vmem>>, vector<8x1xf32>
    %3 = vector.broadcast %2 : vector<8x1xf32> to vector<8x256xf32>
    %4 = arith.mulf %1, %3 : vector<8x256xf32>
    %c0_4 = arith.constant 0 : index
    %c0_5 = arith.constant 0 : index
    %5 = vector.load %arg5[%c0_4, %c0_5] : memref<8x1xf32, #tpu.memory_space<vmem>>, vector<8x1xf32>
    %6 = vector.broadcast %5 : vector<8x1xf32> to vector<8x256xf32>
    %7 = arith.addf %4, %6 : vector<8x256xf32>
    %cst = arith.constant 0.000000e+00 : f32
    %8 = vector.broadcast %cst : f32 to vector<8x256xf32>
    %9 = arith.maximumf %7, %8 : vector<8x256xf32>
    %10 = tpu.iota {dimensions = array<i32: 1>} : vector<1x256xi32>
    %c16_i32 = arith.constant 16 : i32
    %c0_i32 = arith.constant 0 : i32
    %11 = arith.cmpi eq, %c16_i32, %c0_i32 : i32
    %c1_i32 = arith.constant 1 : i32
    %12 = arith.select %11, %c1_i32, %c16_i32 : i32
    %13 = vector.broadcast %12 : i32 to vector<1x256xi32>
    %14 = arith.remsi %10, %13 : vector<1x256xi32>
    %c0_i32_6 = arith.constant 0 : i32
    %15 = vector.broadcast %c0_i32_6 : i32 to vector<1x256xi32>
    %16 = arith.cmpi ne, %14, %15 : vector<1x256xi32>
    %c0_i32_7 = arith.constant 0 : i32
    %17 = vector.broadcast %c0_i32_7 : i32 to vector<1x256xi32>
    %18 = arith.cmpi slt, %14, %17 : vector<1x256xi32>
    %c0_i32_8 = arith.constant 0 : i32
    %19 = arith.cmpi slt, %12, %c0_i32_8 : i32
    %20 = vector.broadcast %19 : i1 to vector<1x256xi1>
    %21 = vector.broadcast %20 : vector<1x256xi1> to vector<1x256xi1>
    %22 = arith.xori %18, %21 : vector<1x256xi1>
    %23 = arith.andi %22, %16 : vector<1x256xi1>
    %24 = vector.broadcast %12 : i32 to vector<1x256xi32>
    %25 = arith.addi %14, %24 : vector<1x256xi32>
    %26 = arith.select %23, %25, %14 : vector<1x256xi1>, vector<1x256xi32>
    %c16_i32_9 = arith.constant 16 : i32
    %27 = vector.broadcast %c16_i32_9 : i32 to vector<1x256xi32>
    %28 = arith.cmpi sge, %10, %27 : vector<1x256xi32>
    %c240_i32 = arith.constant 240 : i32
    %29 = vector.broadcast %c240_i32 : i32 to vector<1x256xi32>
    %30 = arith.cmpi slt, %10, %29 : vector<1x256xi32>
    %c1_i32_10 = arith.constant 1 : i32
    %31 = vector.broadcast %c1_i32_10 : i32 to vector<1x256xi32>
    %32 = arith.cmpi sge, %26, %31 : vector<1x256xi32>
    %c14_i32 = arith.constant 14 : i32
    %33 = vector.broadcast %c14_i32 : i32 to vector<1x256xi32>
    %34 = arith.cmpi sle, %26, %33 : vector<1x256xi32>
    %c17_i32 = arith.constant 17 : i32
    %35 = tpu.dynamic_rotate %9 by %c17_i32 dim 1 : vector<8x256xf32>, i32 -> vector<8x256xf32>
    %36 = arith.andi %28, %32 : vector<1x256xi1>
    %cst_11 = arith.constant 0.000000e+00 : f32
    %37 = vector.shape_cast %36 : vector<1x256xi1> to vector<1x256xi1>
    %38 = vector.broadcast %37 : vector<1x256xi1> to vector<8x256xi1>
    %39 = vector.broadcast %cst_11 : f32 to vector<8x256xf32>
    %40 = arith.select %38, %35, %39 : vector<8x256xi1>, vector<8x256xf32>
    %c0_12 = arith.constant 0 : index
    %c0_13 = arith.constant 0 : index
    %41 = vector.load %arg9[%c0_12, %c0_13] : memref<72x256xf32, #tpu.memory_space<vmem>>, vector<8x256xf32>
    tpu.vector_store %arg9[%c0_12, %c0_13], %40 {strides = array<i32>} : memref<72x256xf32, #tpu.memory_space<vmem>>, vector<8x256xf32>,
    %c16_i32_14 = arith.constant 16 : i32
    %42 = tpu.dynamic_rotate %9 by %c16_i32_14 dim 1 : vector<8x256xf32>, i32 -> vector<8x256xf32>
    %cst_15 = arith.constant 0.000000e+00 : f32
    %43 = vector.shape_cast %28 : vector<1x256xi1> to vector<1x256xi1>
    %44 = vector.broadcast %43 : vector<1x256xi1> to vector<8x256xi1>
    %45 = vector.broadcast %cst_15 : f32 to vector<8x256xf32>
    %46 = arith.select %44, %42, %45 : vector<8x256xi1>, vector<8x256xf32>
    %c8 = arith.constant 8 : index
    %c0_16 = arith.constant 0 : index
    %47 = vector.load %arg9[%c8, %c0_16] : memref<72x256xf32, #tpu.memory_space<vmem>>, vector<8x256xf32>
    tpu.vector_store %arg9[%c8, %c0_16], %46 {strides = array<i32>} : memref<72x256xf32, #tpu.memory_space<vmem>>, vector<8x256xf32>,
    %c15_i32 = arith.constant 15 : i32
    %48 = tpu.dynamic_rotate %9 by %c15_i32 dim 1 : vector<8x256xf32>, i32 -> vector<8x256xf32>
    %49 = arith.andi %28, %34 : vector<1x256xi1>
    %cst_17 = arith.constant 0.000000e+00 : f32
    %50 = vector.shape_cast %49 : vector<1x256xi1> to vector<1x256xi1>
    %51 = vector.broadcast %50 : vector<1x256xi1> to vector<8x256xi1>
    %52 = vector.broadcast %cst_17 : f32 to vector<8x256xf32>
    %53 = arith.select %51, %48, %52 : vector<8x256xi1>, vector<8x256xf32>
    %c16 = arith.constant 16 : index
    %c0_18 = arith.constant 0 : index
    %54 = vector.load %arg9[%c16, %c0_18] : memref<72x256xf32, #tpu.memory_space<vmem>>, vector<8x256xf32>
    tpu.vector_store %arg9[%c16, %c0_18], %53 {strides = array<i32>} : memref<72x256xf32, #tpu.memory_space<vmem>>, vector<8x256xf32>,
    %c1_i32_19 = arith.constant 1 : i32
    %55 = tpu.dynamic_rotate %9 by %c1_i32_19 dim 1 : vector<8x256xf32>, i32 -> vector<8x256xf32>
    %cst_20 = arith.constant 0.000000e+00 : f32
    %56 = vector.shape_cast %32 : vector<1x256xi1> to vector<1x256xi1>
    %57 = vector.broadcast %56 : vector<1x256xi1> to vector<8x256xi1>
    %58 = vector.broadcast %cst_20 : f32 to vector<8x256xf32>
    %59 = arith.select %57, %55, %58 : vector<8x256xi1>, vector<8x256xf32>
    %c24 = arith.constant 24 : index
    %c0_21 = arith.constant 0 : index
    %60 = vector.load %arg9[%c24, %c0_21] : memref<72x256xf32, #tpu.memory_space<vmem>>, vector<8x256xf32>
    tpu.vector_store %arg9[%c24, %c0_21], %59 {strides = array<i32>} : memref<72x256xf32, #tpu.memory_space<vmem>>, vector<8x256xf32>,
    %c32 = arith.constant 32 : index
    %c0_22 = arith.constant 0 : index
    %61 = vector.load %arg9[%c32, %c0_22] : memref<72x256xf32, #tpu.memory_space<vmem>>, vector<8x256xf32>
    tpu.vector_store %arg9[%c32, %c0_22], %9 {strides = array<i32>} : memref<72x256xf32, #tpu.memory_space<vmem>>, vector<8x256xf32>,
    %c255_i32 = arith.constant 255 : i32
    %62 = tpu.dynamic_rotate %9 by %c255_i32 dim 1 : vector<8x256xf32>, i32 -> vector<8x256xf32>
    %cst_23 = arith.constant 0.000000e+00 : f32
    %63 = vector.shape_cast %34 : vector<1x256xi1> to vector<1x256xi1>
    %64 = vector.broadcast %63 : vector<1x256xi1> to vector<8x256xi1>
    %65 = vector.broadcast %cst_23 : f32 to vector<8x256xf32>
    %66 = arith.select %64, %62, %65 : vector<8x256xi1>, vector<8x256xf32>
    %c40 = arith.constant 40 : index
    %c0_24 = arith.constant 0 : index
    %67 = vector.load %arg9[%c40, %c0_24] : memref<72x256xf32, #tpu.memory_space<vmem>>, vector<8x256xf32>
    tpu.vector_store %arg9[%c40, %c0_24], %66 {strides = array<i32>} : memref<72x256xf32, #tpu.memory_space<vmem>>, vector<8x256xf32>,
    %c241_i32 = arith.constant 241 : i32
    %68 = tpu.dynamic_rotate %9 by %c241_i32 dim 1 : vector<8x256xf32>, i32 -> vector<8x256xf32>
    %69 = arith.andi %30, %32 : vector<1x256xi1>
    %cst_25 = arith.constant 0.000000e+00 : f32
    %70 = vector.shape_cast %69 : vector<1x256xi1> to vector<1x256xi1>
    %71 = vector.broadcast %70 : vector<1x256xi1> to vector<8x256xi1>
    %72 = vector.broadcast %cst_25 : f32 to vector<8x256xf32>
    %73 = arith.select %71, %68, %72 : vector<8x256xi1>, vector<8x256xf32>
    %c48 = arith.constant 48 : index
    %c0_26 = arith.constant 0 : index
    %74 = vector.load %arg9[%c48, %c0_26] : memref<72x256xf32, #tpu.memory_space<vmem>>, vector<8x256xf32>
    tpu.vector_store %arg9[%c48, %c0_26], %73 {strides = array<i32>} : memref<72x256xf32, #tpu.memory_space<vmem>>, vector<8x256xf32>,
    %c240_i32_27 = arith.constant 240 : i32
    %75 = tpu.dynamic_rotate %9 by %c240_i32_27 dim 1 : vector<8x256xf32>, i32 -> vector<8x256xf32>
    %cst_28 = arith.constant 0.000000e+00 : f32
    %76 = vector.shape_cast %30 : vector<1x256xi1> to vector<1x256xi1>
    %77 = vector.broadcast %76 : vector<1x256xi1> to vector<8x256xi1>
    %78 = vector.broadcast %cst_28 : f32 to vector<8x256xf32>
    %79 = arith.select %77, %75, %78 : vector<8x256xi1>, vector<8x256xf32>
    %c56 = arith.constant 56 : index
    %c0_29 = arith.constant 0 : index
    %80 = vector.load %arg9[%c56, %c0_29] : memref<72x256xf32, #tpu.memory_space<vmem>>, vector<8x256xf32>
    tpu.vector_store %arg9[%c56, %c0_29], %79 {strides = array<i32>} : memref<72x256xf32, #tpu.memory_space<vmem>>, vector<8x256xf32>,
    %c239_i32 = arith.constant 239 : i32
    %81 = tpu.dynamic_rotate %9 by %c239_i32 dim 1 : vector<8x256xf32>, i32 -> vector<8x256xf32>
    %82 = arith.andi %30, %34 : vector<1x256xi1>
    %cst_30 = arith.constant 0.000000e+00 : f32
    %83 = vector.shape_cast %82 : vector<1x256xi1> to vector<1x256xi1>
    %84 = vector.broadcast %83 : vector<1x256xi1> to vector<8x256xi1>
    %85 = vector.broadcast %cst_30 : f32 to vector<8x256xf32>
    %86 = arith.select %84, %81, %85 : vector<8x256xi1>, vector<8x256xf32>
    %c64 = arith.constant 64 : index
    %c0_31 = arith.constant 0 : index
    %87 = vector.load %arg9[%c64, %c0_31] : memref<72x256xf32, #tpu.memory_space<vmem>>, vector<8x256xf32>
    tpu.vector_store %arg9[%c64, %c0_31], %86 {strides = array<i32>} : memref<72x256xf32, #tpu.memory_space<vmem>>, vector<8x256xf32>,
    %c0_32 = arith.constant 0 : index
    %c0_33 = arith.constant 0 : index
    %88 = vector.load %arg2[%c0_32, %c0_33] : memref<8x72xf32, #tpu.memory_space<vmem>>, vector<8x72xf32>
    %c0_34 = arith.constant 0 : index
    %c0_35 = arith.constant 0 : index
    %89 = vector.load %arg9[%c0_34, %c0_35] : memref<72x256xf32, #tpu.memory_space<vmem>>, vector<72x256xf32>
    %cst_36 = arith.constant dense<0.000000e+00> : vector<8x256xf32>
    %90 = tpu.matmul %88, %89, %cst_36 {dimension_numbers = #tpu.dot_dimension_numbers<[1], [0], [0], [1], [0, 0, 1, 1], [], []>} : vector<8x72xf32>, vector<72x256xf32>, vector<8x256xf32> -> vector<8x256xf32>
    %c0_37 = arith.constant 0 : index
    %c0_38 = arith.constant 0 : index
    %91 = vector.load %arg3[%c0_37, %c0_38] : memref<8x1xf32, #tpu.memory_space<vmem>>, vector<8x1xf32>
    %92 = vector.broadcast %91 : vector<8x1xf32> to vector<8x256xf32>
    %93 = arith.addf %90, %92 : vector<8x256xf32>
    %cst_39 = arith.constant dense<0.000000e+00> : vector<8xf32>
    %94 = vector.multi_reduction <add>, %93, %cst_39 [1] : vector<8x256xf32> to vector<8xf32>
    %95 = vector.shape_cast %94 : vector<8xf32> to vector<8x1xf32>
    %c0_40 = arith.constant 0 : index
    %c0_41 = arith.constant 0 : index
    %c0_42 = arith.constant 0 : index
    %96 = vector.load %arg7[%c0_40, %c0_41, %c0_42] : memref<1x8x1xf32, #tpu.memory_space<vmem>>, vector<1x8x1xf32>
    %97 = vector.shape_cast %96 : vector<1x8x1xf32> to vector<8x1xf32>
    %98 = vector.shape_cast %95 : vector<8x1xf32> to vector<1x8x1xf32>
    tpu.vector_store %arg7[%c0_40, %c0_41, %c0_42], %98 {strides = array<i32>} : memref<1x8x1xf32, #tpu.memory_space<vmem>>, vector<1x8x1xf32>,
    %99 = arith.mulf %93, %93 : vector<8x256xf32>
    %cst_43 = arith.constant dense<0.000000e+00> : vector<8xf32>
    %100 = vector.multi_reduction <add>, %99, %cst_43 [1] : vector<8x256xf32> to vector<8xf32>
    %101 = vector.shape_cast %100 : vector<8xf32> to vector<8x1xf32>
    %c0_44 = arith.constant 0 : index
    %c0_45 = arith.constant 0 : index
    %c0_46 = arith.constant 0 : index
    %102 = vector.load %arg8[%c0_44, %c0_45, %c0_46] : memref<1x8x1xf32, #tpu.memory_space<vmem>>, vector<1x8x1xf32>
    %103 = vector.shape_cast %102 : vector<1x8x1xf32> to vector<8x1xf32>
    %104 = vector.shape_cast %101 : vector<8x1xf32> to vector<1x8x1xf32>
    tpu.vector_store %arg8[%c0_44, %c0_45, %c0_46], %104 {strides = array<i32>} : memref<1x8x1xf32, #tpu.memory_space<vmem>>, vector<1x8x1xf32>,
    %c0_47 = arith.constant 0 : index
    %c0_48 = arith.constant 0 : index
    %c0_49 = arith.constant 0 : index
    %105 = vector.load %arg6[%c0_47, %c0_48, %c0_49] : memref<1x8x256xf32, #tpu.memory_space<vmem>>, vector<1x8x256xf32>
    %106 = vector.shape_cast %105 : vector<1x8x256xf32> to vector<8x256xf32>
    %107 = vector.shape_cast %93 : vector<8x256xf32> to vector<1x8x256xf32>
    tpu.vector_store %arg6[%c0_47, %c0_48, %c0_49], %107 {strides = array<i32>} : memref<1x8x256xf32, #tpu.memory_space<vmem>>, vector<1x8x256xf32>,
    return
  }
  func.func @transform_0(%arg0: i32) -> (i32, i32, i32) {
    %c0_i32 = arith.constant 0 : i32
    %c0_i32_0 = arith.constant 0 : i32
    %c0_i32_1 = arith.constant 0 : i32
    return %arg0, %c0_i32, %c0_i32_0 : i32, i32, i32
  }
  func.func @transform_1(%arg0: i32) -> (i32, i32) {
    %c0_i32 = arith.constant 0 : i32
    %c0_i32_0 = arith.constant 0 : i32
    %c0_i32_1 = arith.constant 0 : i32
    return %c0_i32, %c0_i32_0 : i32, i32
  }
  func.func @transform_2(%arg0: i32) -> (i32, i32) {
    %c0_i32 = arith.constant 0 : i32
    %c0_i32_0 = arith.constant 0 : i32
    %c0_i32_1 = arith.constant 0 : i32
    return %c0_i32, %c0_i32_0 : i32, i32
  }
  func.func @transform_3(%arg0: i32) -> (i32, i32) {
    %c0_i32 = arith.constant 0 : i32
    %c0_i32_0 = arith.constant 0 : i32
    %c0_i32_1 = arith.constant 0 : i32
    return %c0_i32, %c0_i32_0 : i32, i32
  }
  func.func @transform_4(%arg0: i32) -> (i32, i32) {
    %c0_i32 = arith.constant 0 : i32
    %c0_i32_0 = arith.constant 0 : i32
    %c0_i32_1 = arith.constant 0 : i32
    return %c0_i32, %c0_i32_0 : i32, i32
  }
  func.func @transform_5(%arg0: i32) -> (i32, i32, i32) {
    %c0_i32 = arith.constant 0 : i32
    %c0_i32_0 = arith.constant 0 : i32
    %c0_i32_1 = arith.constant 0 : i32
    return %arg0, %c0_i32, %c0_i32_0 : i32, i32, i32
  }
  func.func @transform_6(%arg0: i32) -> (i32, i32, i32) {
    %c0_i32 = arith.constant 0 : i32
    %c0_i32_0 = arith.constant 0 : i32
    %c0_i32_1 = arith.constant 0 : i32
    return %arg0, %c0_i32, %c0_i32_0 : i32, i32, i32
  }
  func.func @transform_7(%arg0: i32) -> (i32, i32, i32) {
    %c0_i32 = arith.constant 0 : i32
    %c0_i32_0 = arith.constant 0 : i32
    %c0_i32_1 = arith.constant 0 : i32
    return %arg0, %c0_i32, %c0_i32_0 : i32, i32, i32
  }
}

</mosaic_0001>

<bundles_post_ra>
// kernel: double_conv_forward.5
= control target key start
LH: loop header
LB: loop body
LE: loop exit
PB: predicated region body
PF: predicated region fallthrough
CT: control target
= control target key end

     0   :  { %s300_s12 = smov 0   ;;  %s323_s0 = inlined_call_operand.vmem [shape: f32[2,8,256], index: 0, kind: input, shape index: {}]   ;;  %s324_s1 = inlined_call_operand.vmem [shape: f32[8,1], index: 1, kind: input, shape index: {}]   ;;  %s325_s2 = inlined_call_operand.vmem [shape: f32[8,1], index: 2, kind: input, shape index: {}]   ;;  %s326_s3 = inlined_call_operand.vmem [shape: f32[2,8,256], index: 3, kind: output, shape index: {}]  }
   0x1 LB: > { %s248_s13 = sadd.s32 4294967295, %s277_s12   ;;  %p252_p0 = scmp.ge.s32.totalorder %s277_s12, 1  ;;  %s277_s12 = sphi %s300_s12, %s13_s12  }
   0x2   : > { %p137_p1 = scmp.lt.s32.totalorder %s277_s12, 3 }
   0x4   : > { %p138_p2 = pnand %p252_p0, %p137_p1 }
   0x5   : > { %p161_p3 = scmp.lt.s32.totalorder (!%p138_p2), %s248_s13, 1 }
   0x6   : > { %141 = sbr.rel (%p138_p2) target bundleno = 146 (0x92), region = 32 }
   0xb   : > { %v173_v0 = vld [vmem:[%s324_s1] sm:$0xff]  ;;  %v279_v1 = vmov 0   ;;  %s328_s13 = smov (!%p161_p3, %s248_s13), 1 }
   0xc   : > { %270 = vset.pattern.permute.xlu0 %v279_v1  ;;  %v181_v2 = vld [vmem:[%s325_s2] sm:$0xff]  ;;  %s259_s18 = sshll.u32 %s328_s13, 4 }
   0xd   : > { %176 = vperm.xlu0 %270, %v173_v0   ;;  %s165_s21 = scalar_lea.vmem %s323_s0, %s259_s18  ;;  %s170_s24 = scalar_lea.vmem %s326_s3, %s259_s18 }
   0xe   : > { %v171_v4 = vld [vmem:[%s165_s21] sm:$0xff]  ;;  %v172_v5 = vld [vmem:[%s165_s21 + $0x8] sm:$0xff] }
  0x11   : > { %184 = vperm.xlu0 %270, %v181_v2  }
  0x88   : > { %v177_v3 = vpop.permute.xlu0 %176 }
  0x89   : > { %v179_v6 = vmul.f32 %v177_v3, %v171_v4  ;;  %v180_v7 = vmul.f32 %v177_v3, %v172_v5 }
  0x8c   : > { %v185_v8 = vpop.permute.xlu0 %184 }
  0x8d   : > { %v187_v9 = vadd.f32 %v185_v8, %v179_v6  ;;  %v188_v10 = vadd.f32 %v185_v8, %v180_v7 }
  0x8f   : > { %v189_v11 = vmax.f32 %v187_v9, 0.0  ;;  %v190_v12 = vmax.f32 %v188_v10, 0.0 }
  0x91   : > { %191 = vst [vmem:[%s170_s24] sm:$0xff] %v189_v11  ;;  %192 = vst [vmem:[%s170_s24 + $0x8] sm:$0xff] %v190_v12 }
  0x92 PF: > { %s13_s12 = sadd.s32 1, %s277_s12  }
  0x93   : > { %p10_p4 = scmp.ge.s32.totalorder %s13_s12, 4  }
  0x95   :  { %12 = sbr.rel (!%p10_p4) target bundleno = 1 (0x1), region = 62 }

// kernel: double_conv_forward.3
= control target key start
LH: loop header
LB: loop body
LE: loop exit
PB: predicated region body
PF: predicated region fallthrough
CT: control target
= control target key end

     0   :  { %s804_s24 = smov 0   ;;  %s925_s0 = inlined_call_operand.vmem [shape: f32[2,8,256], index: 0, kind: input, shape index: {}]   ;;  %s926_s1 = inlined_call_operand.vmem [shape: f32[8,72], index: 1, kind: input, shape index: {}]   ;;  %s927_s2 = inlined_call_operand.vmem [shape: f32[8,1], index: 2, kind: input, shape index: {}]   ;;  %s928_s3 = inlined_call_operand.vmem [shape: f32[8,1], index: 3, kind: input, shape index: {}]   ;;  %s929_s4 = inlined_call_operand.vmem [shape: f32[8,1], index: 4, kind: input, shape index: {}]   ;;  %s930_s5 = inlined_call_operand.vmem [shape: f32[2,8,256], index: 5, kind: output, shape index: {0}]   ;;  %s931_s6 = inlined_call_operand.vmem [shape: f32[2,8,1], index: 6, kind: output, shape index: {1}]   ;;  %s932_s7 = inlined_call_operand.vmem [shape: f32[2,8,1], index: 7, kind: output, shape index: {2}]  }
   0x1 LB: > { %s697_s3 = sadd.s32 4294967295, %s752_s24   ;;  %p701_p0 = scmp.ge.s32.totalorder %s752_s24, 1  ;;  %s752_s24 = sphi %s804_s24, %s18_s24  }
   0x2   : > { %p242_p1 = scmp.lt.s32.totalorder %s752_s24, 3 }
   0x4   : > { %p243_p2 = pnand %p701_p0, %p242_p1 }
   0x5   : > { %p282_p3 = scmp.lt.s32.totalorder (!%p243_p2), %s697_s3, 1  ;;  %s754_s28 = smov (!%p243_p2), 112  }
   0x6   : > { %246 = sbr.rel (%p243_p2) target bundleno = 501 (0x1f5), region = 40  ;;  %s755_s29 = smov (!%p243_p2), 111  }
   0x7   : > { %s756_s30 = smov (!%p243_p2), 113   ;;  %s757_s8 = smov (!%p243_p2), 127  }
   0x8   : > { %s758_s9 = smov (!%p243_p2), 1   ;;  %s761_s10 = smov (!%p243_p2), 15  }
   0x9   : > { %s762_s11 = smov (!%p243_p2), 16   ;;  %s763_s12 = smov (!%p243_p2), 17  }
   0xb   : > { %s942_s3 = smov (!%p282_p3, %s697_s3), 1  ;;  %v759_v2 = vmov 0.0   ;;  %v760_v3 = vmov 0   ;;  %v486_v4 = vld [vmem:[%s927_s2] sm:$0xff]  ;;  %v302_v5 = vlaneseq }
   0xc   : > { %s711_s4 = sshll.u32 %s942_s3, 4  ;;  %560 = vmatprep.mubr.f32.mxu0 %v759_v2  ;;  %745 = vset.pattern.permute.xlu0 %v760_v3  ;;  %v467_v46 = vld [vmem:[%s926_s1] sm:$0xff]  ;;  %s706_s20 = sshll.u32 %s942_s3, 3 }
   0xd   : > { %s286_s27 = scalar_lea.vmem %s925_s0, %s711_s4  ;;  %v843_v6 = vand.u32 127, %v302_v5  ;;  %s291_s19 = scalar_lea.vmem %s930_s5, %s711_s4 }
   0xe   : > { %v820_v0 = vld [vmem:[%s286_s27] sm:$0xff]  ;;  %v824_v1 = vld [vmem:[%s286_s27 + $0x8] sm:$0xff]  ;;  %s295_s23 = scalar_lea.vmem %s931_s6, %s706_s20  ;;  %s299_s26 = scalar_lea.vmem %s932_s7, %s706_s20 }
   0xf   : > { %435 = vrot.lane.b32.xlu1 %v820_v0, %s754_s28  ;;  %450 = vrot.lane.b32.xlu0 %v820_v0, %s755_s29  ;;  %v304_v7 = vadd.s32 128, %v843_v6  ;;  %v309_v12 = vand.u32 15, %v843_v6  ;;  %vm454_vm2 = vcmp.lt.s32.totalorder %v843_v6, 111  ;;  %vm439_vm4 = vcmp.lt.s32.totalorder %v843_v6, 112 }
  0x10   : > { %vm422_vm7 = vcmp.lt.s32.totalorder %v843_v6, 113  ;;  %vm407_vm10 = vcmp.lt.s32.totalorder %v843_v6, 127  ;;  %vm390_vm11 = vcmp.lt.s32.totalorder %v843_v6, 1  ;;  %vm329_vm12 = vcmp.ge.s32.totalorder %v843_v6, 16 }
  0x11   : > { %v316_v8 = vand.u32 15, %v304_v7  ;;  %vm332_vm0 = vcmp.lt.s32.totalorder %v304_v7, 240  ;;  %vm856_vm5 = vcmp.le.s32.totalorder %v309_v12, 14  ;;  %vm871_vm9 = vcmp.ge.s32.totalorder %v309_v12, 1 }
  0x12   : > { %vm373_vm13 = vcmp.lt.s32.totalorder %v843_v6, 15  ;;  %vm376_vm14 = vmand %vm329_vm12, %vm856_vm5  ;;  %vm358_vm15 = vcmp.lt.s32.totalorder %v843_v6, 16 }
  0x13   : > { %437 = vrot.lane.b32.xlu1 %v824_v1, %s754_s28  ;;  %452 = vrot.lane.b32.xlu0 %v824_v1, %s755_s29  ;;  %vm846_vm1 = vcmp.le.s32.totalorder %v316_v8, 14  ;;  %vm860_vm6 = vcmp.ge.s32.totalorder %v316_v8, 1 }
  0x14   : > { %vm458_vm3 = vmand %vm332_vm0, %vm846_vm1 }
  0x15   : > { %vm426_vm8 = vmand %vm332_vm0, %vm860_vm6 }
  0x17   : > { %420 = vrot.lane.b32.xlu1 %v824_v1, %s756_s30  ;;  %418 = vrot.lane.b32.xlu0 %v820_v0, %s756_s30 }
  0x1b   : > { %405 = vrot.lane.b32.xlu1 %v824_v1, %s757_s8  ;;  %403 = vrot.lane.b32.xlu0 %v820_v0, %s757_s8 }
  0x1f   : > { %388 = vrot.lane.b32.xlu1 %v824_v1, %s758_s9  ;;  %386 = vrot.lane.b32.xlu0 %v820_v0, %s758_s9 }
  0x23   : > { %371 = vrot.lane.b32.xlu1 %v824_v1, %s761_s10  ;;  %369 = vrot.lane.b32.xlu0 %v820_v0, %s761_s10 }
  0x27   : > { %356 = vrot.lane.b32.xlu1 %v824_v1, %s762_s11  ;;  %354 = vrot.lane.b32.xlu0 %v820_v0, %s762_s11 }
  0x2b   : > { %339 = vrot.lane.b32.xlu1 %v824_v1, %s763_s12  ;;  %337 = vrot.lane.b32.xlu0 %v820_v0, %s763_s12 }
  0x2f   : > { %489 = vperm.xlu0 %745, %v486_v4  }
  0x81   : > { %v436_v9 = vpop.permute.xlu1 %435  ;;  %v451_v10 = vpop.permute.xlu0 %450 }
  0x85   : > { %v438_v13 = vpop.permute.xlu1 %437  ;;  %v453_v14 = vpop.permute.xlu0 %452 }
  0x86   : > { %v456_v17 = vsel %vm454_vm2, %v453_v14, %v451_v10  ;;  %v455_v18 = vsel %vm454_vm2, %v451_v10, %v453_v14  ;;  %v441_v19 = vsel %vm439_vm4, %v438_v13, %v436_v9  ;;  %v440_v22 = vsel %vm439_vm4, %v436_v9, %v438_v13 }
  0x87   : > { %713 = vmatprep.subr.msk.mxu0 %vm458_vm3, %v456_v17  ;;  %vm492_vm2 = vcmask 588800   ;;  %vm570_vm3 = vcmask 7168  }
  0x88   : > { %714 = vmatpush1.msk.msra.mxu0 %vm856_vm5, %v455_v18 }
  0x89   : > { %v421_v20 = vpop.permute.xlu1 %420  ;;  %715 = vmatprep.subr.msk.mxu0 %vm332_vm0, %v441_v19  ;;  %v419_v21 = vpop.permute.xlu0 %418  ;;  %vm341_vm0 = vcmp.lt.s32.totalorder %v843_v6, 17 }
  0x8a   : > { %v423_v24 = vsel %vm422_vm7, %v419_v21, %v421_v20  ;;  %v424_v25 = vsel %vm422_vm7, %v421_v20, %v419_v21  ;;  %513 = vmatpush1.msra.mxu0 %v440_v22 }
  0x8b   : > { %716 = vmatprep.subr.msk.mxu0 %vm426_vm8, %v424_v25 }
  0x8c   : > { %717 = vmatpush1.msk.msra.mxu0 %vm871_vm9, %v423_v24 }
  0x8d   : > { %v406_v26 = vpop.permute.xlu1 %405  ;;  %v404_v27 = vpop.permute.xlu0 %403 }
  0x8e   : > { %v408_v28 = vsel %vm407_vm10, %v404_v27, %v406_v26  ;;  %v409_v29 = vsel %vm407_vm10, %v406_v26, %v404_v27 }
  0x8f   : > { %718 = vmatprep.subr.msk.mxu0 %vm846_vm1, %v409_v29 }
  0x90   : > { %719 = vmatpush1.msk.msra.mxu0 %vm856_vm5, %v408_v28 }
  0x91   : > { %v389_v30 = vpop.permute.xlu1 %388  ;;  %518 = vmatprep.subr.mxu0 %v824_v1  ;;  %v387_v31 = vpop.permute.xlu0 %386 }
  0x92   : > { %v391_v32 = vsel %vm390_vm11, %v387_v31, %v389_v30  ;;  %v392_v33 = vsel %vm390_vm11, %v389_v30, %v387_v31  ;;  %519 = vmatpush1.msra.mxu0 %v820_v0 }
  0x93   : > { %720 = vmatprep.subr.msk.mxu0 %vm860_vm6, %v391_v32 }
  0x94   : > { %721 = vmatpush1.msk.msra.mxu0 %vm871_vm9, %v392_v33 }
  0x95   : > { %v372_v34 = vpop.permute.xlu1 %371  ;;  %v370_v35 = vpop.permute.xlu0 %369 }
  0x96   : > { %v374_v36 = vsel %vm373_vm13, %v370_v35, %v372_v34  ;;  %v375_v37 = vsel %vm373_vm13, %v372_v34, %v370_v35 }
  0x97   : > { %722 = vmatprep.subr.msk.mxu0 %vm846_vm1, %v374_v36  ;;  %vm344_vm1 = vmand %vm329_vm12, %vm871_vm9 }
  0x98   : > { %723 = vmatpush1.msk.msra.mxu0 %vm376_vm14, %v375_v37 }
  0x99   : > { %v357_v38 = vpop.permute.xlu1 %356  ;;  %v355_v39 = vpop.permute.xlu0 %354 }
  0x9a   : > { %v360_v40 = vsel %vm358_vm15, %v357_v38, %v355_v39  ;;  %v359_v41 = vsel %vm358_vm15, %v355_v39, %v357_v38 }
  0x9b   : > { %524 = vmatprep.subr.mxu0 %v359_v41 }
  0x9c   : > { %724 = vmatpush1.msk.msra.mxu0 %vm329_vm12, %v360_v40 }
  0x9d   : > { %v340_v42 = vpop.permute.xlu1 %339  ;;  %v338_v43 = vpop.permute.xlu0 %337 }
  0x9e   : > { %v342_v44 = vsel %vm341_vm0, %v338_v43, %v340_v42  ;;  %v343_v45 = vsel %vm341_vm0, %v340_v42, %v338_v43 }
  0x9f   : > { %725 = vmatprep.subr.msk.mxu0 %vm860_vm6, %v342_v44 }
  0xa0   : > { %726 = vmatpush1.msk.msra.mxu0 %vm344_vm1, %v343_v45 }
  0xa1   : > { %708 = vmatmul.mubr.msk.f32.vlgmr.msra.gmra.mxu0 %vm492_vm2, %v467_v46 }
  0xaa   : > { %v490_v47 = vpop.permute.xlu0 %489 }
 0x161   : > { %v562_v48 = vpop.f32.mrf.mxu0 }
 0x162   : > { %v563_v49 = vadd.f32 %v562_v48, %v490_v47 }
 0x163   : > { %v564_v50 = vpop.f32.mrf.mxu0 }
 0x164   : > { %v565_v51 = vadd.f32 %v564_v50, %v490_v47  ;;  %578 = vst [vmem:[%s291_s19] sm:$0xff] %v563_v49  ;;  %v572_v53 = vmul.f32 %v563_v49, %v563_v49 }
 0x166   : > { %579 = vst [vmem:[%s291_s19 + $0x8] sm:$0xff] %v565_v51  ;;  %v567_v52 = vadd.f32 %v565_v51, %v563_v49  ;;  %v573_v54 = vmul.f32 %v565_v51, %v565_v51 }
 0x168   : > { %568 = vadd.xlane.f32.xlu1 %v567_v52  ;;  %v574_v55 = vadd.f32 %v573_v54, %v572_v53 }
 0x16a   : > { %575 = vadd.xlane.f32.xlu0 %v574_v55 }
 0x1f1   : > { %v569_v56 = vpop.xlane.xlu1 %568 }
 0x1f2   : > { %571 = vst.msk [vmem:[%s295_s23] sm:$0xff] %vm570_vm3, %v569_v56 }
 0x1f3   : > { %v576_v57 = vpop.xlane.xlu0 %575 }
 0x1f4   : > { %577 = vst.msk [vmem:[%s299_s26] sm:$0xff] %vm570_vm3, %v576_v57 }
 0x1f5 PF: > { %s18_s24 = sadd.s32 1, %s752_s24  }
 0x1f6   : > { %p15_p4 = scmp.ge.s32.totalorder %s18_s24, 4  }
 0x1f8   :  { %17 = sbr.rel (!%p15_p4) target bundleno = 1 (0x1), region = 94 }

// kernel: double_conv_forward.4
= control target key start
LH: loop header
LB: loop body
LE: loop exit
PB: predicated region body
PF: predicated region fallthrough
CT: control target
= control target key end

     0   :  { %s822_s24 = smov 0   ;;  %s949_s0 = inlined_call_operand.vmem [shape: f32[2,8,256], index: 0, kind: input, shape index: {}]   ;;  %s950_s1 = inlined_call_operand.vmem [shape: f32[8,72], index: 1, kind: input, shape index: {}]   ;;  %s951_s2 = inlined_call_operand.vmem [shape: f32[8,1], index: 2, kind: input, shape index: {}]   ;;  %s952_s3 = inlined_call_operand.vmem [shape: f32[8,1], index: 3, kind: input, shape index: {}]   ;;  %s953_s4 = inlined_call_operand.vmem [shape: f32[8,1], index: 4, kind: input, shape index: {}]   ;;  %s954_s5 = inlined_call_operand.vmem [shape: f32[2,8,256], index: 5, kind: output, shape index: {0}]   ;;  %s955_s6 = inlined_call_operand.vmem [shape: f32[2,8,1], index: 6, kind: output, shape index: {1}]   ;;  %s956_s7 = inlined_call_operand.vmem [shape: f32[2,8,1], index: 7, kind: output, shape index: {2}]  }
   0x1 LB: > { %s715_s25 = sadd.s32 4294967295, %s770_s24   ;;  %p719_p0 = scmp.ge.s32.totalorder %s770_s24, 1  ;;  %s770_s24 = sphi %s822_s24, %s18_s24  }
   0x2   : > { %p242_p1 = scmp.lt.s32.totalorder %s770_s24, 3 }
   0x4   : > { %p243_p2 = pnand %p719_p0, %p242_p1 }
   0x5   : > { %p282_p3 = scmp.lt.s32.totalorder (!%p243_p2), %s715_s25, 1  ;;  %s773_s11 = smov (!%p243_p2), 112  }
   0x6   : > { %246 = sbr.rel (%p243_p2) target bundleno = 635 (0x27b), region = 40  ;;  %s774_s12 = smov (!%p243_p2), 111  }
   0x7   : > { %s775_s13 = smov (!%p243_p2), 113   ;;  %s776_s14 = smov (!%p243_p2), 127  }
   0x8   : > { %s777_s15 = smov (!%p243_p2), 1   ;;  %s778_s16 = smov (!%p243_p2), 15  }
   0x9   : > { %s779_s17 = smov (!%p243_p2), 16   ;;  %s781_s18 = smov (!%p243_p2), 17  }
   0xb   : > { %v302_v0 = vld [vmem:[%s952_s3] sm:$0xff]  ;;  %v772_v1 = vmov 0   ;;  %s966_s25 = smov (!%p282_p3, %s715_s25), 1  ;;  %v780_v13 = vmov 0.0   ;;  %v320_v15 = vlaneseq }
   0xc   : > { %763 = vset.pattern.permute.xlu0 %v772_v1  ;;  %v310_v2 = vld [vmem:[%s953_s4] sm:$0xff]  ;;  %s729_s30 = sshll.u32 %s966_s25, 4  ;;  %578 = vmatprep.mubr.f32.mxu0 %v780_v13  ;;  %s724_s28 = sshll.u32 %s966_s25, 3 }
   0xd   : > { %305 = vperm.xlu0 %763, %v302_v0   ;;  %s286_s10 = scalar_lea.vmem %s949_s0, %s729_s30  ;;  %v504_v14 = vld [vmem:[%s951_s2] sm:$0xff]  ;;  %v867_v16 = vand.u32 127, %v320_v15  ;;  %s291_s27 = scalar_lea.vmem %s954_s5, %s729_s30 }
   0xe   : > { %v300_v4 = vld [vmem:[%s286_s10] sm:$0xff]  ;;  %v301_v5 = vld [vmem:[%s286_s10 + $0x8] sm:$0xff]  ;;  %s295_s9 = scalar_lea.vmem %s955_s6, %s724_s28 }
   0xf   : > { %v322_v17 = vadd.s32 128, %v867_v16  ;;  %v327_v22 = vand.u32 15, %v867_v16  ;;  %vm472_vm2 = vcmp.lt.s32.totalorder %v867_v16, 111  ;;  %vm457_vm5 = vcmp.lt.s32.totalorder %v867_v16, 112  ;;  %v485_v56 = vld [vmem:[%s950_s1] sm:$0xff] }
  0x10   : > { %vm440_vm7 = vcmp.lt.s32.totalorder %v867_v16, 113  ;;  %vm425_vm10 = vcmp.lt.s32.totalorder %v867_v16, 127  ;;  %vm408_vm11 = vcmp.lt.s32.totalorder %v867_v16, 1  ;;  %vm347_vm12 = vcmp.ge.s32.totalorder %v867_v16, 16 }
  0x11   : > { %313 = vperm.xlu0 %763, %v310_v2   ;;  %v334_v18 = vand.u32 15, %v322_v17  ;;  %vm350_vm0 = vcmp.lt.s32.totalorder %v322_v17, 240  ;;  %vm879_vm4 = vcmp.le.s32.totalorder %v327_v22, 14  ;;  %vm895_vm9 = vcmp.ge.s32.totalorder %v327_v22, 1 }
  0x12   : > { %vm391_vm13 = vcmp.lt.s32.totalorder %v867_v16, 15  ;;  %vm394_vm14 = vmand %vm347_vm12, %vm879_vm4  ;;  %vm376_vm15 = vcmp.lt.s32.totalorder %v867_v16, 16 }
  0x13   : > { %vm870_vm1 = vcmp.le.s32.totalorder %v334_v18, 14  ;;  %vm886_vm6 = vcmp.ge.s32.totalorder %v334_v18, 1 }
  0x14   : > { %vm476_vm3 = vmand %vm350_vm0, %vm870_vm1 }
  0x15   : > { %vm444_vm8 = vmand %vm350_vm0, %vm886_vm6 }
  0x88   : > { %v306_v3 = vpop.permute.xlu0 %305 }
  0x89   : > { %v308_v6 = vmul.f32 %v306_v3, %v300_v4  ;;  %v309_v8 = vmul.f32 %v306_v3, %v301_v5 }
  0x8c   : > { %v314_v7 = vpop.permute.xlu0 %313 }
  0x8d   : > { %v316_v9 = vadd.f32 %v314_v7, %v308_v6  ;;  %v317_v10 = vadd.f32 %v314_v7, %v309_v8 }
  0x8f   : > { %v844_v11 = vmax.f32 %v316_v9, 0.0  ;;  %v848_v12 = vmax.f32 %v317_v10, 0.0 }
  0x91   : > { %453 = vrot.lane.b32.xlu0 %v844_v11, %s773_s11  ;;  %468 = vrot.lane.b32.xlu1 %v844_v11, %s774_s12 }
  0x95   : > { %436 = vrot.lane.b32.xlu0 %v844_v11, %s775_s13  ;;  %470 = vrot.lane.b32.xlu1 %v848_v12, %s774_s12 }
  0x99   : > { %421 = vrot.lane.b32.xlu0 %v844_v11, %s776_s14  ;;  %455 = vrot.lane.b32.xlu1 %v848_v12, %s773_s11  ;;  %s299_s11 = scalar_lea.vmem %s956_s7, %s724_s28 }
  0x9d   : > { %404 = vrot.lane.b32.xlu0 %v844_v11, %s777_s15  ;;  %438 = vrot.lane.b32.xlu1 %v848_v12, %s775_s13 }
  0xa1   : > { %387 = vrot.lane.b32.xlu0 %v844_v11, %s778_s16  ;;  %423 = vrot.lane.b32.xlu1 %v848_v12, %s776_s14 }
  0xa5   : > { %372 = vrot.lane.b32.xlu0 %v844_v11, %s779_s17  ;;  %406 = vrot.lane.b32.xlu1 %v848_v12, %s777_s15 }
  0xa9   : > { %355 = vrot.lane.b32.xlu0 %v844_v11, %s781_s18  ;;  %389 = vrot.lane.b32.xlu1 %v848_v12, %s778_s16 }
  0xad   : > { %507 = vperm.xlu0 %763, %v504_v14   ;;  %374 = vrot.lane.b32.xlu1 %v848_v12, %s779_s17 }
  0xb1   : > { %357 = vrot.lane.b32.xlu1 %v848_v12, %s781_s18 }
 0x103   : > { %v454_v19 = vpop.permute.xlu0 %453  ;;  %v469_v20 = vpop.permute.xlu1 %468 }
 0x107   : > { %v437_v23 = vpop.permute.xlu0 %436  ;;  %v471_v24 = vpop.permute.xlu1 %470 }
 0x108   : > { %v474_v26 = vsel %vm472_vm2, %v471_v24, %v469_v20  ;;  %v473_v27 = vsel %vm472_vm2, %v469_v20, %v471_v24  ;;  %vm510_vm2 = vcmask 588800  }
 0x109   : > { %731 = vmatprep.subr.msk.mxu0 %vm476_vm3, %v474_v26  ;;  %vm588_vm3 = vcmask 7168  }
 0x10a   : > { %732 = vmatpush1.msk.msra.mxu0 %vm879_vm4, %v473_v27 }
 0x10b   : > { %v422_v28 = vpop.permute.xlu0 %421  ;;  %v456_v29 = vpop.permute.xlu1 %455 }
 0x10c   : > { %v459_v31 = vsel %vm457_vm5, %v456_v29, %v454_v19  ;;  %v458_v32 = vsel %vm457_vm5, %v454_v19, %v456_v29 }
 0x10d   : > { %733 = vmatprep.subr.msk.mxu0 %vm350_vm0, %v459_v31  ;;  %vm359_vm0 = vcmp.lt.s32.totalorder %v867_v16, 17 }
 0x10e   : > { %531 = vmatpush1.msra.mxu0 %v458_v32 }
 0x10f   : > { %v439_v33 = vpop.permute.xlu1 %438  ;;  %v405_v37 = vpop.permute.xlu0 %404 }
 0x110   : > { %v441_v35 = vsel %vm440_vm7, %v437_v23, %v439_v33  ;;  %v442_v36 = vsel %vm440_vm7, %v439_v33, %v437_v23 }
 0x111   : > { %734 = vmatprep.subr.msk.mxu0 %vm444_vm8, %v442_v36 }
 0x112   : > { %735 = vmatpush1.msk.msra.mxu0 %vm895_vm9, %v441_v35 }
 0x113   : > { %v424_v38 = vpop.permute.xlu1 %423  ;;  %v388_v41 = vpop.permute.xlu0 %387 }
 0x114   : > { %v426_v39 = vsel %vm425_vm10, %v422_v28, %v424_v38  ;;  %v427_v40 = vsel %vm425_vm10, %v424_v38, %v422_v28 }
 0x115   : > { %736 = vmatprep.subr.msk.mxu0 %vm870_vm1, %v427_v40 }
 0x116   : > { %737 = vmatpush1.msk.msra.mxu0 %vm879_vm4, %v426_v39 }
 0x117   : > { %536 = vmatprep.subr.mxu0 %v848_v12  ;;  %v407_v42 = vpop.permute.xlu1 %406  ;;  %v373_v48 = vpop.permute.xlu0 %372 }
 0x118   : > { %v409_v43 = vsel %vm408_vm11, %v405_v37, %v407_v42  ;;  %v410_v44 = vsel %vm408_vm11, %v407_v42, %v405_v37  ;;  %537 = vmatpush1.msra.mxu0 %v844_v11 }
 0x119   : > { %738 = vmatprep.subr.msk.mxu0 %vm886_vm6, %v409_v43 }
 0x11a   : > { %739 = vmatpush1.msk.msra.mxu0 %vm895_vm9, %v410_v44 }
 0x11b   : > { %v390_v45 = vpop.permute.xlu1 %389  ;;  %v356_v52 = vpop.permute.xlu0 %355 }
 0x11c   : > { %v392_v46 = vsel %vm391_vm13, %v388_v41, %v390_v45  ;;  %v393_v47 = vsel %vm391_vm13, %v390_v45, %v388_v41 }
 0x11d   : > { %740 = vmatprep.subr.msk.mxu0 %vm870_vm1, %v392_v46  ;;  %vm362_vm1 = vmand %vm347_vm12, %vm895_vm9 }
 0x11e   : > { %741 = vmatpush1.msk.msra.mxu0 %vm394_vm14, %v393_v47 }
 0x11f   : > { %v375_v49 = vpop.permute.xlu1 %374 }
 0x120   : > { %v378_v50 = vsel %vm376_vm15, %v375_v49, %v373_v48  ;;  %v377_v51 = vsel %vm376_vm15, %v373_v48, %v375_v49 }
 0x121   : > { %542 = vmatprep.subr.mxu0 %v377_v51 }
 0x122   : > { %742 = vmatpush1.msk.msra.mxu0 %vm347_vm12, %v378_v50 }
 0x123   : > { %v358_v53 = vpop.permute.xlu1 %357 }
 0x124   : > { %v360_v54 = vsel %vm359_vm0, %v356_v52, %v358_v53  ;;  %v361_v55 = vsel %vm359_vm0, %v358_v53, %v356_v52 }
 0x125   : > { %743 = vmatprep.subr.msk.mxu0 %vm886_vm6, %v360_v54 }
 0x126   : > { %744 = vmatpush1.msk.msra.mxu0 %vm362_vm1, %v361_v55 }
 0x127   : > { %726 = vmatmul.mubr.msk.f32.vlgmr.msra.gmra.mxu0 %vm510_vm2, %v485_v56 }
 0x128   : > { %v508_v57 = vpop.permute.xlu0 %507 }
 0x1e7   : > { %v580_v58 = vpop.f32.mrf.mxu0 }
 0x1e8   : > { %v581_v59 = vadd.f32 %v580_v58, %v508_v57 }
 0x1e9   : > { %v582_v60 = vpop.f32.mrf.mxu0 }
 0x1ea   : > { %596 = vst [vmem:[%s291_s27] sm:$0xff] %v581_v59  ;;  %v583_v61 = vadd.f32 %v582_v60, %v508_v57  ;;  %v590_v63 = vmul.f32 %v581_v59, %v581_v59 }
 0x1ec   : > { %597 = vst [vmem:[%s291_s27 + $0x8] sm:$0xff] %v583_v61  ;;  %v585_v62 = vadd.f32 %v583_v61, %v581_v59  ;;  %v591_v0 = vmul.f32 %v583_v61, %v583_v61 }
 0x1ee   : > { %586 = vadd.xlane.f32.xlu1 %v585_v62  ;;  %v592_v1 = vadd.f32 %v591_v0, %v590_v63 }
 0x1f0   : > { %593 = vadd.xlane.f32.xlu0 %v592_v1 }
 0x277   : > { %v587_v2 = vpop.xlane.xlu1 %586 }
 0x278   : > { %589 = vst.msk [vmem:[%s295_s9] sm:$0xff] %vm588_vm3, %v587_v2 }
 0x279   : > { %v594_v3 = vpop.xlane.xlu0 %593 }
 0x27a   : > { %595 = vst.msk [vmem:[%s299_s11] sm:$0xff] %vm588_vm3, %v594_v3 }
 0x27b PF: > { %s18_s24 = sadd.s32 1, %s770_s24  }
 0x27c   : > { %p15_p4 = scmp.ge.s32.totalorder %s18_s24, 4  }
 0x27e   :  { %17 = sbr.rel (!%p15_p4) target bundleno = 1 (0x1), region = 94 }

</bundles_post_ra>
